<compile_context>
chip_gen: v7x
topology: tpu7x:2x2x1
jax: 0.10.0
libtpu: 0.0.40
codegen_flags: <defaults>
</compile_context>

<pallas_src>
import functools

import jax
import jax.numpy as jnp
from jax import lax
from jax.experimental import pallas as pl
from jax.experimental.pallas import tpu as pltpu

IGNORE_INDEX = 255
_OUT_LANES = 128          # lane-dense per-batch partial row: [kl, ce_sum, ce_cnt, 0...]


def _bilinear_matrix(in_size: int, out_size: int) -> jnp.ndarray:
    """Interpolation matrix matching F.interpolate(mode='bilinear', align_corners=False)."""
    if in_size == out_size:
        return jnp.eye(out_size, dtype=jnp.float32)
    scale = in_size / out_size
    dst = jnp.arange(out_size, dtype=jnp.float32)
    src = jnp.maximum((dst + 0.5) * scale - 0.5, 0.0)
    i0 = jnp.clip(jnp.floor(src).astype(jnp.int32), 0, in_size - 1)
    i1 = jnp.minimum(i0 + 1, in_size - 1)
    lam = src - i0.astype(jnp.float32)
    rows = jnp.arange(out_size)
    m = jnp.zeros((out_size, in_size), jnp.float32)
    m = m.at[rows, i0].add(1.0 - lam)
    m = m.at[rows, i1].add(lam)
    return m


def _distill_kernel(student_ref, teacher_ref, axt_ref, ayb_ref, labels_ref,
                    out_ref, *, C, HP, H_out, W_out, temperature):
    inv_t = 1.0 / temperature
    # Native-dtype DMA, per-tile upcast (halves HBM traffic for bf16 logits).
    s = student_ref[0].astype(jnp.float32) * inv_t            # (C*H, W)
    t = teacher_ref[0].astype(jnp.float32) * inv_t             # (C*H, W)

    # --- log_softmax(student/T) over lanes (torch dim=-1) ---
    s_max = jnp.max(s, axis=-1, keepdims=True)
    s_den = jnp.sum(jnp.exp(s - s_max), axis=-1, keepdims=True)
    log_p_s = (s - s_max) - jnp.log(s_den)                      # soft_targets (log-probs)

    # --- softmax / log_softmax(teacher/T) over lanes ---
    t_max = jnp.max(t, axis=-1, keepdims=True)
    t_exp = jnp.exp(t - t_max)
    t_den = jnp.sum(t_exp, axis=-1, keepdims=True)
    log_p_t = (t - t_max) - jnp.log(t_den)
    p_t = t_exp * (1.0 / t_den)                                 # (rows,1) divide, broadcast mul

    # --- KLDivLoss partial: sum(target*(log target - input)); /B in wrapper ---
    kl_part = jnp.sum(p_t * (log_p_t - log_p_s), keepdims=True)          # (1,1)

    # --- bilinear upsample of student log-softmax, hoisted/fused MXU matmuls ---
    t1 = jnp.dot(log_p_s, axt_ref[...],
                 preferred_element_type=jnp.float32)            # (C*H, W_out)
    # row interp fused across channels via block-diagonal matrix:
    # channel c lives in rows [c*HP, c*HP + H_out) of `up`.
    up = jnp.dot(ayb_ref[...], t1,
                 preferred_element_type=jnp.float32)            # (C*HP, W_out)

    # --- argmax over channels (strict > keeps the first max, torch semantics).
    # C is a small static int; per-iteration cost is 3 VPU ops on a small tile.
    best_val = up[0:HP, :]
    best_idx = jnp.zeros((HP, W_out), jnp.int32)
    for c in range(1, C):
        cand = up[c * HP:(c + 1) * HP, :]                       # sublane-aligned view
        take = cand > best_val
        best_val = jnp.where(take, cand, best_val)
        best_idx = jnp.where(take, jnp.int32(c), best_idx)

    # --- CrossEntropy(ignore_index=255): argmax map as logits, classes along
    #     the resized-height axis (dim 1 of the 3-D CE input). ---
    logits = best_idx[0:H_out, :].astype(jnp.float32)           # (H_out, W_out)
    m = jnp.max(logits, axis=0, keepdims=True)
    lse = jnp.log(jnp.sum(jnp.exp(logits - m), axis=0, keepdims=True)) + m
    logp = logits - lse                                         # (H_out, W_out)

    lbl = labels_ref[0]                                         # (1, W_out) int32
    cls = lax.broadcasted_iota(jnp.int32, (H_out, W_out), 0)
    picked = jnp.sum(jnp.where(cls == lbl, logp, 0.0), axis=0, keepdims=True)   # (1, W_out)
    valid = lbl != IGNORE_INDEX
    ce_sum = jnp.sum(jnp.where(valid, -picked, 0.0), keepdims=True)             # (1,1)
    ce_cnt = jnp.sum(valid.astype(jnp.float32), keepdims=True)                  # (1,1)

    # --- lane-dense per-batch partial row: [kl_part, ce_sum, ce_cnt, 0...] ---
    lane = lax.broadcasted_iota(jnp.int32, (1, _OUT_LANES), 1)
    row = (jnp.where(lane == 0, kl_part, 0.0)
           + jnp.where(lane == 1, ce_sum, 0.0)
           + jnp.where(lane == 2, ce_cnt, 0.0))
    out_ref[0] = row


def distillation_loss(student_logits, teacher_logits, labels,
                      temperature=3.0, alpha=0.5):
    B, C, H, W = student_logits.shape
    H_out, W_out = int(labels.shape[-2]), int(labels.shape[-1])
    HP = ((H_out + 7) // 8) * 8                        # sublane-padded per-channel rows

    # Glue: interpolation operands (align_corners=False), built once at trace time.
    ax = _bilinear_matrix(W, W_out)                    # (W_out, W)
    ay = _bilinear_matrix(H, H_out)                    # (H_out, H)
    axt = ax.T                                         # (W, W_out)
    # Block-diagonal row-interp matrix: channel c occupies rows [c*HP, c*HP+H_out)
    # and columns [c*H, (c+1)*H) -> a single matmul interpolates every channel.
    ayb = jnp.zeros((C * HP, C * H), jnp.float32)
    for c in range(C):
        ayb = ayb.at[c * HP:c * HP + H_out, c * H:(c + 1) * H].set(ay)

    # No wrapper-side dtype cast: DMA native dtype, upcast inside the kernel.
    student3 = student_logits.reshape(B, C * H, W)
    teacher3 = teacher_logits.reshape(B, C * H, W)
    labels3 = labels.astype(jnp.int32).reshape(B, 1, W_out)

    # VMEM budget: 2 logits blocks x double-buffer + f32 intermediates + small
    # operands.  32 MiB floor (raises the 16 MiB v5e default), 64 MiB cap (v7x).
    itemsize = jnp.dtype(student_logits.dtype).itemsize
    block_bytes = C * H * W * itemsize
    est = (2 * 2 * block_bytes
           + 8 * C * H * W * 4
           + 2 * (C * H * W_out + C * HP * W_out) * 4
           + (W * W_out + C * HP * C * H + W_out + _OUT_LANES) * 4)
    vmem_limit = int(min(64 * 1024 * 1024, max(32 * 1024 * 1024, 2 * est)))

    n = B * C * H * W
    cost = pl.CostEstimate(
        flops=int(12 * n
                  + 2 * B * (C * H) * W * W_out
                  + 2 * B * (C * HP) * (C * H) * W_out
                  + 8 * B * H_out * W_out),
        transcendentals=int(2 * n + 4 * B * C * H + B * H_out * W_out),
        bytes_accessed=int(2 * n * itemsize + labels.size * 4
                           + (W * W_out + C * HP * C * H) * 4
                           + B * _OUT_LANES * 4),
    )

    kernel = functools.partial(
        _distill_kernel, C=C, HP=HP, H_out=H_out, W_out=W_out,
        temperature=float(temperature))

    grid_spec = pltpu.PrefetchScalarGridSpec(
        num_scalar_prefetch=0,
        grid=(B,),
        in_specs=[
            pl.BlockSpec((1, C * H, W), lambda b: (b, 0, 0)),     # student block
            pl.BlockSpec((1, C * H, W), lambda b: (b, 0, 0)),     # teacher block
            pl.BlockSpec((W, W_out), lambda b: (0, 0)),           # column-interp matrix
            pl.BlockSpec((C * HP, C * H), lambda b: (0, 0)),      # block-diag row-interp
            pl.BlockSpec((1, 1, W_out), lambda b: (b, 0, 0)),     # labels row
        ],
        out_specs=pl.BlockSpec((1, 1, _OUT_LANES), lambda b: (b, 0, 0)),
    )

    parts = pl.pallas_call(
        kernel,
        out_shape=jax.ShapeDtypeStruct((B, 1, _OUT_LANES), jnp.float32),
        grid_spec=grid_spec,
        compiler_params=pltpu.CompilerParams(
            dimension_semantics=("parallel",),     # per-batch partials -> megacore-shardable
            vmem_limit_bytes=vmem_limit),
        cost_estimate=cost,
    )(student3, teacher3, axt, ayb, labels3)

    # Tiny XLA epilogue: combine per-batch partials into the scalar loss.
    parts = parts[:, 0, :]
    kl = jnp.sum(parts[:, 0]) / float(B)                         # batchmean
    ce_cnt = jnp.sum(parts[:, 2])
    # Guard against an all-ignored batch (PyTorch would produce NaN there).
    ce = jnp.sum(parts[:, 1]) / jnp.maximum(ce_cnt, 1.0)
    return alpha * ce + (1.0 - alpha) * kl


def _reference_loss(student, teacher, labels, temperature=3.0, alpha=0.5):
    """Pure-JAX reference mirroring the PyTorch forward (for self-check)."""
    B, C, H, W = student.shape
    H_out, W_out = labels.shape[-2], labels.shape[-1]
    ls = jax.nn.log_softmax(student / temperature, axis=-1)
    pt = jax.nn.softmax(teacher / temperature, axis=-1)
    lpt = jax.nn.log_softmax(teacher / temperature, axis=-1)
    kl = jnp.sum(pt * (lpt - ls)) / B
    ay = _bilinear_matrix(H, H_out)
    ax = _bilinear_matrix(W, W_out)
    up = jnp.einsum('oh,bchw,pw->bcop', ay, ls, ax)
    idx = jnp.argmax(up, axis=1).astype(jnp.float32)             # (B, H_out, W_out)
    logp = jax.nn.log_softmax(idx, axis=1)
    lbl = labels.astype(jnp.int32)
    safe = jnp.clip(lbl, 0, H_out - 1)
    picked = jnp.take_along_axis(logp, safe[:, None, :], axis=1)[:, 0, :]
    valid = lbl != IGNORE_INDEX
    ce = jnp.sum(jnp.where(valid, -picked, 0.0)) / jnp.sum(valid)
    return alpha * ce + (1.0 - alpha) * kl


if __name__ == "__main__":
    key = jax.random.PRNGKey(0)
    k1, k2, k3, k4 = jax.random.split(key, 4)

    # Small but lane-dense shapes: W and W_out map to TPU lanes.
    B, C, H, W = 2, 4, 8, 128
    W_OUT = 256   # labels: (B, W_OUT); resize target = labels.shape[-2:] = (B, W_OUT)

    student = jax.random.normal(k1, (B, C, H, W), jnp.float32)
    teacher = jax.random.normal(k2, (B, C, H, W), jnp.float32)
    lbl = jax.random.randint(k3, (B, W_OUT), 0, B)            # class ids in [0, H_out)
    drop = jax.random.uniform(k4, (B, W_OUT)) < 0.2
    labels = jnp.where(drop, IGNORE_INDEX, lbl).astype(jnp.int32)

    loss = distillation_loss(student, teacher, labels, temperature=3.0, alpha=0.5)
    loss = jax.block_until_ready(loss)

    ref = _reference_loss(student, teacher, labels, temperature=3.0, alpha=0.5)
    assert jnp.allclose(loss, ref, atol=2e-3, rtol=2e-3), (float(loss), float(ref))
    print("KERNEL_OK")
</pallas_src>

<mosaic_0001>
module attributes {stable_mosaic.version = 11 : i64} {
  func.func @_distill_kernel(%arg0: i32, %arg1: memref<1x32x128xf32, #tpu.memory_space<vmem>>, %arg2: memref<1x32x128xf32, #tpu.memory_space<vmem>>, %arg3: memref<128x256xf32, #tpu.memory_space<vmem>>, %arg4: memref<32x32xf32, #tpu.memory_space<vmem>>, %arg5: memref<1x1x256xi32, #tpu.memory_space<vmem>>, %arg6: memref<1x1x128xf32, #tpu.memory_space<vmem>>) attributes {dimension_semantics = [#tpu.dimension_semantics<parallel>], iteration_bounds = array<i64: 2>, scalar_prefetch = 0 : i64, scratch_operands = 0 : i64, tpu.core_type = #tpu.core_type<tc>, window_params = [{transform_indices = @transform_0, window_bounds = array<i64: 1, 32, 128>}, {transform_indices = @transform_1, window_bounds = array<i64: 1, 32, 128>}, {pipeline_mode = #tpu.pipeline_mode<synchronous>, transform_indices = @transform_2, window_bounds = array<i64: 128, 256>}, {pipeline_mode = #tpu.pipeline_mode<synchronous>, transform_indices = @transform_3, window_bounds = array<i64: 32, 32>}, {transform_indices = @transform_4, window_bounds = array<i64: 1, 1, 256>}, {transform_indices = @transform_5, window_bounds = array<i64: 1, 1, 128>}]} {
    %c0 = arith.constant 0 : index
    %c0_0 = arith.constant 0 : index
    %c0_1 = arith.constant 0 : index
    %0 = vector.load %arg1[%c0, %c0_0, %c0_1] : memref<1x32x128xf32, #tpu.memory_space<vmem>>, vector<1x32x128xf32>
    %1 = vector.shape_cast %0 : vector<1x32x128xf32> to vector<32x128xf32>
    %cst = arith.constant 0.333333343 : f32
    %2 = vector.broadcast %cst : f32 to vector<32x128xf32>
    %3 = arith.mulf %1, %2 : vector<32x128xf32>
    %c0_2 = arith.constant 0 : index
    %c0_3 = arith.constant 0 : index
    %c0_4 = arith.constant 0 : index
    %4 = vector.load %arg2[%c0_2, %c0_3, %c0_4] : memref<1x32x128xf32, #tpu.memory_space<vmem>>, vector<1x32x128xf32>
    %5 = vector.shape_cast %4 : vector<1x32x128xf32> to vector<32x128xf32>
    %cst_5 = arith.constant 0.333333343 : f32
    %6 = vector.broadcast %cst_5 : f32 to vector<32x128xf32>
    %7 = arith.mulf %5, %6 : vector<32x128xf32>
    %cst_6 = arith.constant dense<0xFF800000> : vector<32xf32>
    %8 = vector.multi_reduction <maximumf>, %3, %cst_6 [1] : vector<32x128xf32> to vector<32xf32>
    %9 = vector.shape_cast %8 : vector<32xf32> to vector<32x1xf32>
    %10 = vector.broadcast %9 : vector<32x1xf32> to vector<32x128xf32>
    %11 = arith.subf %3, %10 : vector<32x128xf32>
    %12 = math.exp %11 : vector<32x128xf32>
    %cst_7 = arith.constant dense<0.000000e+00> : vector<32xf32>
    %13 = vector.multi_reduction <add>, %12, %cst_7 [1] : vector<32x128xf32> to vector<32xf32>
    %14 = vector.shape_cast %13 : vector<32xf32> to vector<32x1xf32>
    %15 = vector.broadcast %9 : vector<32x1xf32> to vector<32x128xf32>
    %16 = arith.subf %3, %15 : vector<32x128xf32>
    %17 = math.log %14 : vector<32x1xf32>
    %18 = vector.broadcast %17 : vector<32x1xf32> to vector<32x128xf32>
    %19 = arith.subf %16, %18 : vector<32x128xf32>
    %cst_8 = arith.constant dense<0xFF800000> : vector<32xf32>
    %20 = vector.multi_reduction <maximumf>, %7, %cst_8 [1] : vector<32x128xf32> to vector<32xf32>
    %21 = vector.shape_cast %20 : vector<32xf32> to vector<32x1xf32>
    %22 = vector.broadcast %21 : vector<32x1xf32> to vector<32x128xf32>
    %23 = arith.subf %7, %22 : vector<32x128xf32>
    %24 = math.exp %23 : vector<32x128xf32>
    %cst_9 = arith.constant dense<0.000000e+00> : vector<32xf32>
    %25 = vector.multi_reduction <add>, %24, %cst_9 [1] : vector<32x128xf32> to vector<32xf32>
    %26 = vector.shape_cast %25 : vector<32xf32> to vector<32x1xf32>
    %27 = vector.broadcast %21 : vector<32x1xf32> to vector<32x128xf32>
    %28 = arith.subf %7, %27 : vector<32x128xf32>
    %29 = math.log %26 : vector<32x1xf32>
    %30 = vector.broadcast %29 : vector<32x1xf32> to vector<32x128xf32>
    %31 = arith.subf %28, %30 : vector<32x128xf32>
    %cst_10 = arith.constant 1.000000e+00 : f32
    %32 = vector.broadcast %cst_10 : f32 to vector<32x1xf32>
    %33 = arith.divf %32, %26 : vector<32x1xf32>
    %34 = vector.broadcast %33 : vector<32x1xf32> to vector<32x128xf32>
    %35 = arith.mulf %24, %34 : vector<32x128xf32>
    %36 = arith.subf %31, %19 : vector<32x128xf32>
    %37 = arith.mulf %35, %36 : vector<32x128xf32>
    %38 = vector.shape_cast %37 : vector<32x128xf32> to vector<1x32x128xf32>
    %cst_11 = arith.constant dense<0.000000e+00> : vector<1xf32>
    %39 = vector.multi_reduction <add>, %38, %cst_11 [1, 2] : vector<1x32x128xf32> to vector<1xf32>
    %40 = vector.shape_cast %39 : vector<1xf32> to vector<1x1x1xf32>
    %41 = vector.extract %40[0, 0, 0] : f32 from vector<1x1x1xf32>
    %42 = vector.broadcast %41 : f32 to vector<1x1xf32>
    %c0_12 = arith.constant 0 : index
    %c0_13 = arith.constant 0 : index
    %43 = vector.load %arg3[%c0_12, %c0_13] : memref<128x256xf32, #tpu.memory_space<vmem>>, vector<128x256xf32>
    %cst_14 = arith.constant dense<0.000000e+00> : vector<32x256xf32>
    %44 = tpu.matmul %19, %43, %cst_14 {dimension_numbers = #tpu.dot_dimension_numbers<[1], [0], [0], [1], [0, 0, 1, 1], [], []>} : vector<32x128xf32>, vector<128x256xf32>, vector<32x256xf32> -> vector<32x256xf32>
    %c0_15 = arith.constant 0 : index
    %c0_16 = arith.constant 0 : index
    %45 = vector.load %arg4[%c0_15, %c0_16] : memref<32x32xf32, #tpu.memory_space<vmem>>, vector<32x32xf32>
    %cst_17 = arith.constant dense<0.000000e+00> : vector<32x256xf32>
    %46 = tpu.matmul %45, %44, %cst_17 {dimension_numbers = #tpu.dot_dimension_numbers<[1], [0], [0], [1], [0, 0, 1, 1], [], []>} : vector<32x32xf32>, vector<32x256xf32>, vector<32x256xf32> -> vector<32x256xf32>
    %47 = vector.extract_strided_slice %46 {offsets = [0, 0], sizes = [8, 256], strides = [1, 1]} : vector<32x256xf32> to vector<8x256xf32>
    %c0_i32 = arith.constant 0 : i32
    %48 = vector.broadcast %c0_i32 : i32 to vector<8x256xi32>
    %49 = vector.extract_strided_slice %46 {offsets = [8, 0], sizes = [8, 256], strides = [1, 1]} : vector<32x256xf32> to vector<8x256xf32>
    %50 = arith.cmpf ogt, %49, %47 : vector<8x256xf32>
    %51 = arith.select %50, %49, %47 : vector<8x256xi1>, vector<8x256xf32>
    %c1_i32 = arith.constant 1 : i32
    %52 = vector.broadcast %c1_i32 : i32 to vector<8x256xi32>
    %53 = arith.select %50, %52, %48 : vector<8x256xi1>, vector<8x256xi32>
    %54 = vector.extract_strided_slice %46 {offsets = [16, 0], sizes = [8, 256], strides = [1, 1]} : vector<32x256xf32> to vector<8x256xf32>
    %55 = arith.cmpf ogt, %54, %51 : vector<8x256xf32>
    %56 = arith.select %55, %54, %51 : vector<8x256xi1>, vector<8x256xf32>
    %c2_i32 = arith.constant 2 : i32
    %57 = vector.broadcast %c2_i32 : i32 to vector<8x256xi32>
    %58 = arith.select %55, %57, %53 : vector<8x256xi1>, vector<8x256xi32>
    %59 = vector.extract_strided_slice %46 {offsets = [24, 0], sizes = [8, 256], strides = [1, 1]} : vector<32x256xf32> to vector<8x256xf32>
    %60 = arith.cmpf ogt, %59, %56 : vector<8x256xf32>
    %c3_i32 = arith.constant 3 : i32
    %61 = vector.broadcast %c3_i32 : i32 to vector<8x256xi32>
    %62 = arith.select %60, %61, %58 : vector<8x256xi1>, vector<8x256xi32>
    %63 = vector.extract_strided_slice %62 {offsets = [0, 0], sizes = [2, 256], strides = [1, 1]} : vector<8x256xi32> to vector<2x256xi32>
    %64 = arith.sitofp %63 : vector<2x256xi32> to vector<2x256xf32>
    %cst_18 = arith.constant dense<0xFF800000> : vector<256xf32>
    %65 = vector.multi_reduction <maximumf>, %64, %cst_18 [0] : vector<2x256xf32> to vector<256xf32>
    %66 = vector.shape_cast %65 : vector<256xf32> to vector<1x256xf32>
    %67 = vector.broadcast %66 : vector<1x256xf32> to vector<2x256xf32>
    %68 = arith.subf %64, %67 : vector<2x256xf32>
    %69 = math.exp %68 : vector<2x256xf32>
    %cst_19 = arith.constant dense<0.000000e+00> : vector<256xf32>
    %70 = vector.multi_reduction <add>, %69, %cst_19 [0] : vector<2x256xf32> to vector<256xf32>
    %71 = vector.shape_cast %70 : vector<256xf32> to vector<1x256xf32>
    %72 = math.log %71 : vector<1x256xf32>
    %73 = arith.addf %72, %66 : vector<1x256xf32>
    %74 = vector.broadcast %73 : vector<1x256xf32> to vector<2x256xf32>
    %75 = arith.subf %64, %74 : vector<2x256xf32>
    %c0_20 = arith.constant 0 : index
    %c0_21 = arith.constant 0 : index
    %c0_22 = arith.constant 0 : index
    %76 = vector.load %arg5[%c0_20, %c0_21, %c0_22] : memref<1x1x256xi32, #tpu.memory_space<vmem>>, vector<1x1x256xi32>
    %77 = vector.shape_cast %76 : vector<1x1x256xi32> to vector<1x256xi32>
    %78 = tpu.iota {dimensions = array<i32: 0>} : vector<2x256xi32>
    %79 = vector.broadcast %77 : vector<1x256xi32> to vector<2x256xi32>
    %80 = arith.cmpi eq, %78, %79 : vector<2x256xi32>
    %cst_23 = arith.constant 0.000000e+00 : f32
    %81 = vector.broadcast %cst_23 : f32 to vector<2x256xf32>
    %82 = arith.select %80, %75, %81 : vector<2x256xi1>, vector<2x256xf32>
    %cst_24 = arith.constant dense<0.000000e+00> : vector<256xf32>
    %83 = vector.multi_reduction <add>, %82, %cst_24 [0] : vector<2x256xf32> to vector<256xf32>
    %84 = vector.shape_cast %83 : vector<256xf32> to vector<1x256xf32>
    %c255_i32 = arith.constant 255 : i32
    %85 = vector.broadcast %c255_i32 : i32 to vector<1x256xi32>
    %86 = arith.cmpi ne, %77, %85 : vector<1x256xi32>
    %cst_25 = arith.constant 0.000000e+00 : f32
    %87 = vector.broadcast %cst_25 : f32 to vector<1x256xf32>
    %88 = arith.subf %87, %84 : vector<1x256xf32>
    %cst_26 = arith.constant 0.000000e+00 : f32
    %89 = vector.broadcast %cst_26 : f32 to vector<1x256xf32>
    %90 = arith.select %86, %88, %89 : vector<1x256xi1>, vector<1x256xf32>
    %91 = vector.shape_cast %90 : vector<1x256xf32> to vector<1x1x256xf32>
    %cst_27 = arith.constant dense<0.000000e+00> : vector<1xf32>
    %92 = vector.multi_reduction <add>, %91, %cst_27 [1, 2] : vector<1x1x256xf32> to vector<1xf32>
    %93 = vector.shape_cast %92 : vector<1xf32> to vector<1x1x1xf32>
    %94 = vector.extract %93[0, 0, 0] : f32 from vector<1x1x1xf32>
    %95 = vector.broadcast %94 : f32 to vector<1x1xf32>
    %96 = arith.extui %86 : vector<1x256xi1> to vector<1x256xi32>
    %97 = arith.sitofp %96 : vector<1x256xi32> to vector<1x256xf32>
    %98 = vector.shape_cast %97 : vector<1x256xf32> to vector<1x1x256xf32>
    %cst_28 = arith.constant dense<0.000000e+00> : vector<1xf32>
    %99 = vector.multi_reduction <add>, %98, %cst_28 [1, 2] : vector<1x1x256xf32> to vector<1xf32>
    %100 = vector.shape_cast %99 : vector<1xf32> to vector<1x1x1xf32>
    %101 = vector.extract %100[0, 0, 0] : f32 from vector<1x1x1xf32>
    %102 = vector.broadcast %101 : f32 to vector<1x1xf32>
    %103 = tpu.iota {dimensions = array<i32: 1>} : vector<1x128xi32>
    %c0_i32_29 = arith.constant 0 : i32
    %104 = vector.broadcast %c0_i32_29 : i32 to vector<1x128xi32>
    %105 = arith.cmpi eq, %103, %104 : vector<1x128xi32>
    %cst_30 = arith.constant 0.000000e+00 : f32
    %106 = vector.shape_cast %42 : vector<1x1xf32> to vector<1x1xf32>
    %107 = vector.broadcast %106 : vector<1x1xf32> to vector<1x128xf32>
    %108 = vector.broadcast %cst_30 : f32 to vector<1x128xf32>
    %109 = arith.select %105, %107, %108 : vector<1x128xi1>, vector<1x128xf32>
    %c1_i32_31 = arith.constant 1 : i32
    %110 = vector.broadcast %c1_i32_31 : i32 to vector<1x128xi32>
    %111 = arith.cmpi eq, %103, %110 : vector<1x128xi32>
    %cst_32 = arith.constant 0.000000e+00 : f32
    %112 = vector.shape_cast %95 : vector<1x1xf32> to vector<1x1xf32>
    %113 = vector.broadcast %112 : vector<1x1xf32> to vector<1x128xf32>
    %114 = vector.broadcast %cst_32 : f32 to vector<1x128xf32>
    %115 = arith.select %111, %113, %114 : vector<1x128xi1>, vector<1x128xf32>
    %116 = arith.addf %109, %115 : vector<1x128xf32>
    %c2_i32_33 = arith.constant 2 : i32
    %117 = vector.broadcast %c2_i32_33 : i32 to vector<1x128xi32>
    %118 = arith.cmpi eq, %103, %117 : vector<1x128xi32>
    %cst_34 = arith.constant 0.000000e+00 : f32
    %119 = vector.shape_cast %102 : vector<1x1xf32> to vector<1x1xf32>
    %120 = vector.broadcast %119 : vector<1x1xf32> to vector<1x128xf32>
    %121 = vector.broadcast %cst_34 : f32 to vector<1x128xf32>
    %122 = arith.select %118, %120, %121 : vector<1x128xi1>, vector<1x128xf32>
    %123 = arith.addf %116, %122 : vector<1x128xf32>
    %c0_35 = arith.constant 0 : index
    %c0_36 = arith.constant 0 : index
    %c0_37 = arith.constant 0 : index
    %124 = vector.load %arg6[%c0_35, %c0_36, %c0_37] : memref<1x1x128xf32, #tpu.memory_space<vmem>>, vector<1x1x128xf32>
    %125 = vector.shape_cast %124 : vector<1x1x128xf32> to vector<1x128xf32>
    %126 = vector.shape_cast %123 : vector<1x128xf32> to vector<1x1x128xf32>
    tpu.vector_store %arg6[%c0_35, %c0_36, %c0_37], %126 {strides = array<i32>} : memref<1x1x128xf32, #tpu.memory_space<vmem>>, vector<1x1x128xf32>,
    return
  }
  func.func @transform_0(%arg0: i32) -> (i32, i32, i32) {
    %c0_i32 = arith.constant 0 : i32
    %c0_i32_0 = arith.constant 0 : i32
    %c0_i32_1 = arith.constant 0 : i32
    return %arg0, %c0_i32, %c0_i32_0 : i32, i32, i32
  }
  func.func @transform_1(%arg0: i32) -> (i32, i32, i32) {
    %c0_i32 = arith.constant 0 : i32
    %c0_i32_0 = arith.constant 0 : i32
    %c0_i32_1 = arith.constant 0 : i32
    return %arg0, %c0_i32, %c0_i32_0 : i32, i32, i32
  }
  func.func @transform_2(%arg0: i32) -> (i32, i32) {
    %c0_i32 = arith.constant 0 : i32
    %c0_i32_0 = arith.constant 0 : i32
    %c0_i32_1 = arith.constant 0 : i32
    return %c0_i32, %c0_i32_0 : i32, i32
  }
  func.func @transform_3(%arg0: i32) -> (i32, i32) {
    %c0_i32 = arith.constant 0 : i32
    %c0_i32_0 = arith.constant 0 : i32
    %c0_i32_1 = arith.constant 0 : i32
    return %c0_i32, %c0_i32_0 : i32, i32
  }
  func.func @transform_4(%arg0: i32) -> (i32, i32, i32) {
    %c0_i32 = arith.constant 0 : i32
    %c0_i32_0 = arith.constant 0 : i32
    %c0_i32_1 = arith.constant 0 : i32
    return %arg0, %c0_i32, %c0_i32_0 : i32, i32, i32
  }
  func.func @transform_5(%arg0: i32) -> (i32, i32, i32) {
    %c0_i32 = arith.constant 0 : i32
    %c0_i32_0 = arith.constant 0 : i32
    %c0_i32_1 = arith.constant 0 : i32
    return %arg0, %c0_i32, %c0_i32_0 : i32, i32, i32
  }
}

</mosaic_0001>

<bundles_post_ra>
// kernel: tpu_custom_call.1
= control target key start
LH: loop header
LB: loop body
LE: loop exit
PB: predicated region body
PF: predicated region fallthrough
CT: control target
= control target key end

     0   :  { %s1815_s0 = inlined_call_operand.hbm [shape: f32[2,32,128], index: 0, kind: input, shape index: {}]   ;;  %s1816_s1 = inlined_call_operand.hbm [shape: f32[2,32,128], index: 1, kind: input, shape index: {}]   ;;  %s1817_s2 = inlined_call_operand.hbm [shape: f32[128,256], index: 2, kind: input, shape index: {}]   ;;  %s1818_s3 = inlined_call_operand.hbm [shape: f32[32,32], index: 3, kind: input, shape index: {}]   ;;  %s1819_s4 = inlined_call_operand.vmem [shape: s32[2,1,256], index: 4, kind: input, shape index: {}]   ;;  %s1820_s5 = inlined_call_operand.hbm [shape: f32[2,1,128], index: 5, kind: output, shape index: {}]  }
   0x1   :  { %1828 = sst [smem:[#allocation16_spill]] %s1815_s0 }
   0x2   :  { %1829 = sst [smem:[#allocation17_spill]] %s1817_s2 }
   0x3   :  { %10 = vsyncpa [#allocation3], 0 }
   0x4   :  { %12 = vsyncpa [#allocation3 + $0x1], 0 }
   0x5   :  { %13 = vsyncpa [#allocation6], 0 }
   0x6   :  { %15 = vsyncpa [#allocation6 + $0x1], 0 }
   0x7   :  { %16 = vsyncpa [#allocation9], 0 }
   0x8   :  { %17 = vsyncpa [#allocation4], 0 }
   0x9   :  { %19 = vsyncpa [#allocation4 + $0x1], 0  ;;  %s1429_s18 = smov 0   ;;  %s1431_s19 = smov 0  }
   0xa   :  { %s1433_s20 = smov 0   ;;  %s1435_s21 = smov 0  }
   0xb LB: > { %s1450_s22 = sadd.s32 4294967295, %s1385_s21   ;;  %s991_s23 = sadd.s32 4294967294, %s1385_s21   ;;  %s1385_s21 = sphi %s1435_s21, %s1856_s21   ;;  %s1381_s20 = sphi %s1433_s20, %s1855_s20   ;;  %s1377_s19 = sphi %s1431_s19, %s1854_s19   ;;  %s1373_s18 = sphi %s1429_s18, %s1853_s18  }
   0xc   : > { %p45_p0 = scmp.ne.s32.totalorder %s1377_s19, %s1373_s18  ;;  %p1821_p1 = scmp.eq.s32.totalorder %s1450_s22, 0 }
   0xd   : > { %p169_p3 = scmp.eq.s32.totalorder %s991_s23, 1  ;;  %p992_p5 = scmp.ge.s32.totalorder %s1385_s21, 1 }
   0xe   : > { %p1459_p4 = por %p1821_p1, %p45_p0  ;;  %p176_p7 = scmp.lt.s32.totalorder %s1385_s21, 3 }
   0xf   : > { %p1464_p6 = por %p169_p3, %p45_p0  ;;  %s1387_s27 = smov [#allocation7]  }
  0x10   : > { %s1830_s24 = scalar_select %p1459_p4, 1, 0 }
  0x11   : > { %s1831_s25 = scalar_select %p1464_p6, 1, 0 }
  0x12   : > { %p1469_p8 = pnand %p992_p5, %p176_p7  ;;  %s188_s28 = sshll.u32 %s1387_s27, 4  ;;  %s1473_s28 = int_to_ptr.vmem [resolvable:$true] %s188_s28 }
  0x13   : > { %s1388_s30 = smov [#allocation8]   ;;  %s1834_s2 = sld [smem:[#allocation17_spill]] }
  0x14   : > { %p1078_p9 = pneg %p1469_p8  ;;  %s201_s6 = sshll.u32 %s1388_s30, 4  ;;  %s1484_s6 = int_to_ptr.vmem [resolvable:$true] %s201_s6 }
  0x16   : > { %p1480_p11 = pnand %p1078_p9, %p1821_p1 }
  0x18   : > { %p1193_p13 = pneg %p1480_p11 }
  0x19   : > { %s1191_s9 = scalar_lea.hbm %s1834_s2, 4096 }
  0x1a   : > { %p1192_p12 = scmp.ne.s32.totalorder %s1834_s2, %s1191_s9  ;;  %p1198_p5 = scmp.lt.u32.totalorder %s1191_s9, %s1834_s2 }
  0x1c   : > { %p1194_p0 = pnand %p1193_p13, %p1192_p12 }
  0x1e   : > { %p1195_p3 = pneg %p1194_p0 }
  0x20   : > { %p1200_p7 = pnand %p1198_p5, %p1195_p3 }
  0x22   : > { %1203 = shalt.err (!%p1200_p7)
}
  0x23   : > { %s1204_s14 = scalar_lea.vmem %s1473_s28, 4096  ;;  %p1212_p2 = scmp.lt.s32.totalorder %s1473_s28, %s1473_s28 }
  0x24   : > { %p1205_p9 = scmp.ne.s32.totalorder %s1473_s28, %s1204_s14  ;;  %p1213_p12 = scmp.lt.s32.totalorder %s1204_s14, %s1204_s14 }
  0x26   : > { %p1207_p10 = pnand %p1205_p9, %p1193_p13  ;;  %p1214_p0 = por %p1213_p12, %p1212_p2 }
  0x28   : > { %p1208_p1 = pneg %p1207_p10 }
  0x2a   : > { %p1215_p6 = pnand %p1214_p0, %p1208_p1 }
  0x2c   : > { %1218 = shalt.err (!%p1215_p6)
}
  0x2d   : > { %s1389_s15 = smov 256   ;;  %s1390_s16 = smov 16  }
  0x2e   : > { %1081 = dma.hbm_to_vmem [thread:$0]  (!%p1480_p11), %s1834_s2, 4096, %s1473_s28, [#allocation6], %s1389_s15, %s1389_s15, %s1390_s16  }
  0x2f   : > { %s1219_s7 = scalar_lea.hbm %s1818_s3, 512 }
  0x30   : > { %p1220_p2 = scmp.ne.s32.totalorder %s1818_s3, %s1219_s7  ;;  %p1226_p10 = scmp.lt.u32.totalorder %s1219_s7, %s1818_s3 }
  0x32   : > { %p1222_p1 = pnand %p1220_p2, %p1193_p13 }
  0x34   : > { %p1223_p6 = pneg %p1222_p1 }
  0x36   : > { %p1228_p3 = pnand %p1226_p10, %p1223_p6 }
  0x38   : > { %1231 = shalt.err (!%p1228_p3)
}
  0x39   : > { %s1232_s28 = scalar_lea.vmem %s1484_s6, 512  ;;  %p1240_p12 = scmp.lt.s32.totalorder %s1484_s6, %s1484_s6 }
  0x3a   : > { %p1233_p5 = scmp.ne.s32.totalorder %s1484_s6, %s1232_s28  ;;  %p1241_p0 = scmp.lt.s32.totalorder %s1232_s28, %s1232_s28 }
  0x3c   : > { %p1235_p7 = pnand %p1233_p5, %p1193_p13  ;;  %p1242_p2 = por %p1241_p0, %p1240_p12 }
  0x3e   : > { %p1236_p9 = pneg %p1235_p7 }
  0x40   : > { %p1243_p1 = pnand %p1242_p2, %p1236_p9 }
  0x42   : > { %1246 = shalt.err (!%p1243_p1)
}
  0x43   : > { %s1822_s12 = smov 128   ;;  %s1824_s13 = smov 8  }
  0x44   : > { %1084 = dma.hbm_to_vmem [thread:$0]  (!%p1480_p11), %s1818_s3, 512, %s1484_s6, [#allocation9], %s1822_s12, %s1822_s12, %s1824_s13  }
  0x45   : > { %s1542_s16 = sadd.s32 1, %s1385_s21   ;;  %s32_s23 = sadd.s32 1, %s1381_s20 }
  0x46   : > { %s29_s17 = ssub.s32 %s1385_s21, %s1542_s16  ;;  %p39_p6 = scmp.ne.s32.totalorder %s1381_s20, %s1377_s19 }
  0x47   : > { %p30_p13 = scmp.eq.s32.totalorder %s29_s17, 0  ;;  %p40_p10 = scmp.eq.s32.totalorder %s1385_s21, 0 }
  0x48   : > { %p1835_p5 = scmp.eq.s32.totalorder %s1450_s22, 1  ;;  %p1098_p9 = scmp.lt.s32.totalorder %s1385_s21, 2 }
  0x49   : > { %s1551_s27 = scalar_select %p30_p13, %s1381_s20, %s32_s23  }
  0x4a   : > { %p41_p3 = por %p40_p10, %p39_p6  ;;  %p1555_p7 = por %p1835_p5, %p39_p6 }
  0x4b   : > { %s215_s30 = sand.u32 1, %s1381_s20   ;;  %s1016_s6 = sshll.u32 %s1385_s21, 9 }
  0x4c   : > { %s1836_s29 = scalar_select %p1555_p7, 1, 0 }
  0x4d   : > { %s996_s7 = sshll.u32 %s215_s30, 5  ;;  %s1837_s0 = sld [smem:[#allocation16_spill]] }
  0x4e   : > { %s219_s11 = scalar_lea.vmem [#allocation2], %s996_s7  ;;  %p1569_p11 = pnand %p1098_p9, %p41_p3 }
  0x4f   : > { %s226_s28 = sshll.u32 %s219_s11, 4  ;;  %s1576_s23 = scalar_lea.hbm %s1816_s1, %s1016_s6  ;;  %s1567_s28 = int_to_ptr.vmem [resolvable:$true] %s226_s28 }
  0x50   : > { %s240_s8 = scalar_lea.vmem [#allocation5], %s996_s7  ;;  %s1580_s12 = scalar_lea.sflag [#allocation3], %s215_s30 }
  0x51   : > { %s1578_s9 = sshll.u32 %s240_s8, 4  ;;  %p1249_p0 = pneg %p1569_p11  ;;  %s1612_s9 = int_to_ptr.vmem [resolvable:$true] %s1578_s9 }
  0x53   : > { %s1565_s10 = scalar_lea.hbm %s1837_s0, %s1016_s6  ;;  %s1252_s15 = scalar_lea.hbm %s1837_s0, 1024 }
  0x54   : > { %s1247_s11 = scalar_lea.hbm %s1565_s10, 512  ;;  %p1253_p13 = scmp.lt.u32.totalorder %s1565_s10, %s1837_s0 }
  0x55   : > { %p1248_p12 = scmp.ne.s32.totalorder %s1565_s10, %s1247_s11  ;;  %p1254_p6 = scmp.lt.u32.totalorder %s1252_s15, %s1247_s11 }
  0x56   : > { %p1256_p3 = scmp.lt.u32.totalorder %s1247_s11, %s1565_s10 }
  0x57   : > { %p1250_p2 = pnand %p1249_p0, %p1248_p12  ;;  %p1255_p10 = por %p1254_p6, %p1253_p13 }
  0x59   : > { %p1251_p1 = pneg %p1250_p2  ;;  %p1257_p5 = por %p1256_p3, %p1255_p10 }
  0x5b   : > { %p1258_p9 = pnand %p1257_p5, %p1251_p1 }
  0x5d   : > { %1261 = shalt.err (!%p1258_p9)
}
  0x5e   : > { %s1262_s30 = scalar_lea.vmem %s1567_s28, 512  ;;  %s1393_s2 = smov [#allocation2]  }
  0x5f   : > { %p1263_p12 = scmp.ne.s32.totalorder %s1567_s28, %s1262_s30  ;;  %s1267_s13 = sshll.u32 %s1393_s2, 4  ;;  %s1268_s13 = int_to_ptr.vmem [resolvable:$false] %s1267_s13 }
  0x60   : > { %s1269_s7 = scalar_lea.vmem %s1268_s13, 1024  ;;  %p1270_p4 = scmp.lt.s32.totalorder %s1567_s28, %s1268_s13 }
  0x61   : > { %p1265_p2 = pnand %p1263_p12, %p1249_p0  ;;  %p1271_p13 = scmp.lt.s32.totalorder %s1269_s7, %s1262_s30 }
  0x63   : > { %p1266_p7 = pneg %p1265_p2  ;;  %p1272_p6 = por %p1271_p13, %p1270_p4 }
  0x65   : > { %p1273_p10 = pnand %p1272_p6, %p1266_p7 }
  0x67   : > { %1276 = shalt.err (!%p1273_p10)
}
  0x68   : > { %s1839_s8 = smov 8   ;;  %s1840_s11 = smov 128  }
  0x69   : > { %1088 = dma.hbm_to_vmem [thread:$0]  (!%p1569_p11), %s1565_s10, 512, %s1567_s28, %s1580_s12, %s1840_s11, %s1840_s11, %s1839_s8  }
  0x6a   : > { %s236_s15 = sand.u32 1, %s1385_s21   ;;  %s1277_s6 = scalar_lea.hbm %s1576_s23, 512 }
  0x6b   : > { %s1615_s17 = scalar_lea.sflag [#allocation6], %s236_s15  ;;  %p1278_p4 = scmp.ne.s32.totalorder %s1576_s23, %s1277_s6 }
  0x6c   : > { %s1282_s13 = scalar_lea.hbm %s1816_s1, 1024  ;;  %p1283_p3 = scmp.lt.u32.totalorder %s1576_s23, %s1816_s1 }
  0x6d   : > { %p1280_p7 = pnand %p1278_p4, %p1249_p0  ;;  %p1284_p5 = scmp.lt.u32.totalorder %s1282_s13, %s1277_s6 }
  0x6e   : > { %p1286_p12 = scmp.lt.u32.totalorder %s1277_s6, %s1576_s23 }
  0x6f   : > { %p1281_p1 = pneg %p1280_p7  ;;  %p1285_p9 = por %p1284_p5, %p1283_p3 }
  0x71   : > { %p1287_p2 = por %p1286_p12, %p1285_p9 }
  0x73   : > { %p1288_p13 = pnand %p1287_p2, %p1281_p1 }
  0x75   : > { %1291 = shalt.err (!%p1288_p13)
}
  0x76   : > { %s1292_s12 = scalar_lea.vmem %s1612_s9, 512  ;;  %s1394_s10 = smov [#allocation5]  }
  0x77   : > { %p1293_p6 = scmp.ne.s32.totalorder %s1612_s9, %s1292_s12  ;;  %s1297_s28 = sshll.u32 %s1394_s10, 4  ;;  %s1298_s28 = int_to_ptr.vmem [resolvable:$false] %s1297_s28 }
  0x78   : > { %s1299_s0 = scalar_lea.vmem %s1298_s28, 1024  ;;  %p1300_p7 = scmp.lt.s32.totalorder %s1612_s9, %s1298_s28 }
  0x79   : > { %p1295_p10 = pnand %p1293_p6, %p1249_p0  ;;  %p1301_p3 = scmp.lt.s32.totalorder %s1299_s0, %s1292_s12 }
  0x7b   : > { %p1296_p4 = pneg %p1295_p10  ;;  %p1302_p5 = por %p1301_p3, %p1300_p7 }
  0x7d   : > { %p1303_p9 = pnand %p1302_p5, %p1296_p4 }
  0x7f   : > { %1306 = shalt.err (!%p1303_p9)
}
  0x80   : > { %1091 = dma.hbm_to_vmem [thread:$0]  (!%p1569_p11), %s1576_s23, 512, %s1612_s9, %s1615_s17, %s1840_s11, %s1840_s11, %s1839_s8  }
  0x81   : > { %266 = sbr.rel (%p1469_p8) target bundleno = 1233 (0x4d1), region = 40  ;;  %s1647_s15 = sand.u32 (!%p1469_p8), 1, %s1377_s19  }
  0x82   : > { %s1003_s6 = sshll.u32 (!%p1469_p8), %s1647_s15, 5  ;;  %s269_s30 = scalar_lea.sflag (!%p1469_p8), [#allocation3], %s1647_s15 }
  0x83   : > { %s272_s2 = scalar_lea.vmem (!%p1469_p8), [#allocation2], %s1003_s6  ;;  %p1841_p0 = scmp.ne.s32.totalorder (!%p1469_p8), %s1830_s24, 0 }
  0x88   : > { %1352 = dma.done.wait (%p1841_p0), %s269_s30, 512  }
  0x89   : > { %1354 = vsyncadd (%p1841_p0), %s269_s30, 4294966784  ;;  %s277_s14 = sand.u32 1, %s1450_s22   ;;  %s1656_s26 = scalar_lea.vmem [#allocation5], %s1003_s6 }
  0x8a   : > { %s278_s23 = scalar_lea.sflag [#allocation6], %s277_s14 }
  0x8b   : > { %1356 = dma.done.wait (%p1841_p0), %s278_s23, 512  }
  0x8c   : > { %1358 = vsyncadd (%p1841_p0), %s278_s23, 4294966784  ;;  %p1842_p8 = scmp.eq.s32.totalorder %s1450_s22, 0 }
  0x8e   : > { %1360 = dma.done.wait (%p1842_p8), [#allocation6], 4096   ;;  %p1843_p11 = pmov %p1842_p8 }
  0x8f   : > { %p1844_p1 = pmov %p1842_p8 }
  0x90   : > { %1362 = vsyncadd (%p1843_p11), [#allocation6], 4294963200 }
  0x91   : > { %1364 = dma.done.wait (%p1844_p1), [#allocation9], 512   ;;  %p1845_p12 = pmov %p1844_p1 }
  0x92   : > { %v328_v0 = vld [vmem:[%s272_s2] sm:$0xff]  ;;  %v330_v1 = vld [vmem:[%s272_s2 + $0x10] sm:$0xff]  ;;  %v329_v2 = vld [vmem:[%s272_s2 + $0x8] sm:$0xff]  ;;  %vm581_vm0 = vcmask 261120   ;;  %p324_p2 = scmp.lt.s32.totalorder %s1450_s22, 1  ;;  %vm806_vm4 = vcmask 1040384  }
  0x93   : > { %1366 = vsyncadd (%p1845_p12), [#allocation9], 4294966784  ;;  %v332_v3 = vmul.f32 0.33333334, %v328_v0  ;;  %v334_v4 = vmul.f32 0.33333334, %v330_v1 }
  0x94   : > { %v331_v5 = vld [vmem:[%s272_s2 + $0x18] sm:$0xff]  ;;  %v333_v6 = vmul.f32 0.33333334, %v329_v2  ;;  %v457_v8 = vld [vmem:[#allocation7 + $0x8] sm:$0xff]  ;;  %v456_v10 = vld [vmem:[#allocation7] sm:$0xff]  ;;  %s325_s24 = scalar_select %p324_p2, %s1450_s22, 1 }
  0x95   : > { %344 = vmax.xlane.f32.xlu0 %v332_v3  ;;  %348 = vmax.xlane.f32.xlu1 %v334_v4  ;;  %v335_v7 = vmul.f32 0.33333334, %v331_v5  ;;  %v459_v9 = vld [vmem:[#allocation7 + $0x18] sm:$0xff]  ;;  %v458_v12 = vld [vmem:[#allocation7 + $0x10] sm:$0xff]  ;;  %v461_v13 = vld [vmem:[#allocation7 + $0x28] sm:$0xff]  ;;  %vm701_vm10 = vcmask 1041408  }
  0x96   : > { %v1018_v11 = vpack.c.bf16 %v459_v9, %v457_v8  ;;  %v463_v14 = vld [vmem:[#allocation7 + $0x38] sm:$0xff]  ;;  %v1020_v15 = vpack.c.bf16 %v458_v12, %v456_v10  ;;  %v460_v17 = vld [vmem:[#allocation7 + $0x20] sm:$0xff]  ;;  %v462_v18 = vld [vmem:[#allocation7 + $0x30] sm:$0xff]  ;;  %s1007_s9 = sshll.u32 %s325_s24, 1  ;;  %s1013_s10 = sshll.u32 %s1450_s22, 4 }
  0x97   : > { %v1022_v16 = vpack.c.bf16 %v463_v14, %v461_v13  ;;  %v465_v19 = vld [vmem:[#allocation7 + $0x48] sm:$0xff]  ;;  %v467_v20 = vld [vmem:[#allocation7 + $0x58] sm:$0xff]  ;;  %v1024_v21 = vpack.c.bf16 %v462_v18, %v460_v17  ;;  %v464_v23 = vld [vmem:[#allocation7 + $0x40] sm:$0xff]  ;;  %s327_s17 = scalar_lea.vmem %s1819_s4, %s1007_s9  ;;  %s323_s28 = scalar_lea.vmem [#allocation10], %s1647_s15 }
  0x98   : > { %1019 = vmatprep.subr.bf16.mxu0 %v1018_v11  ;;  %v1026_v22 = vpack.c.bf16 %v467_v20, %v465_v19  ;;  %v466_v24 = vld [vmem:[#allocation7 + $0x50] sm:$0xff]  ;;  %v469_v25 = vld [vmem:[#allocation7 + $0x68] sm:$0xff]  ;;  %v471_v26 = vld [vmem:[#allocation7 + $0x78] sm:$0xff]  ;;  %s871_s0 = sshll.u32 %s323_s28, 4  ;;  %s1771_s2 = scalar_lea.hbm %s1820_s5, %s1013_s10  ;;  %s1773_s0 = int_to_ptr.vmem [resolvable:$true] %s871_s0 }
  0x99   : > { %346 = vmax.xlane.f32.xlu0 %v333_v6  ;;  %350 = vmax.xlane.f32.xlu1 %v335_v7  ;;  %v1028_v27 = vpack.c.bf16 %v466_v24, %v464_v23  ;;  %v1030_v28 = vpack.c.bf16 %v471_v26, %v469_v25  ;;  %v468_v29 = vld [vmem:[#allocation7 + $0x60] sm:$0xff]  ;;  %v470_v30 = vld [vmem:[#allocation7 + $0x70] sm:$0xff]  ;;  %v473_v31 = vld [vmem:[#allocation7 + $0x88] sm:$0xff]  ;;  %s859_s14 = scalar_lea.sflag [#allocation4], %s1647_s15  ;;  %s1307_s23 = scalar_lea.vmem %s1773_s0, 16 }
  0x9a   : > { %1021 = vmatpush1.bf16.msra.mxu0 %v1020_v15  ;;  %v475_v32 = vld [vmem:[#allocation7 + $0x98] sm:$0xff]  ;;  %v1032_v33 = vpack.c.bf16 %v470_v30, %v468_v29  ;;  %v336_v49 = vld [vmem:[%s1656_s26] sm:$0xff]  ;;  %v338_v53 = vld [vmem:[%s1656_s26 + $0x10] sm:$0xff]  ;;  %p1308_p13 = scmp.ne.s32.totalorder %s1773_s0, %s1307_s23  ;;  %p1850_p6 = scmp.ne.s32.totalorder %s1836_s29, 0 }
  0x9b   : > { %1023 = vmatprep.subr.bf16.mxu0 %v1022_v16  ;;  %v1034_v34 = vpack.c.bf16 %v475_v32, %v473_v31  ;;  %v340_v51 = vmul.f32 0.33333334, %v336_v49  ;;  %v337_v54 = vld [vmem:[%s1656_s26 + $0x8] sm:$0xff]  ;;  %v342_v55 = vmul.f32 0.33333334, %v338_v53  ;;  %v339_v57 = vld [vmem:[%s1656_s26 + $0x18] sm:$0xff] }
  0x9c   : > { %v341_v56 = vmul.f32 0.33333334, %v337_v54  ;;  %v472_v58 = vld [vmem:[#allocation7 + $0x80] sm:$0xff]  ;;  %v474_v59 = vld [vmem:[#allocation7 + $0x90] sm:$0xff]  ;;  %v343_v60 = vmul.f32 0.33333334, %v339_v57  ;;  %p1309_p10 = pnand %p1308_p13, %p1850_p6 }
  0x9d   : > { %v1036_v61 = vpack.c.bf16 %v474_v59, %v472_v58  ;;  %v477_v62 = vld [vmem:[#allocation7 + $0xa8] sm:$0xff]  ;;  %v479_v63 = vld [vmem:[#allocation7 + $0xb8] sm:$0xff]  ;;  %v476_v1 = vld [vmem:[#allocation7 + $0xa0] sm:$0xff]  ;;  %v1395_v16 = vmov 0.0   ;;  %s1398_s22 = smov [#allocation10]  }
  0x9e   : > { %1025 = vmatpush1.bf16.msra.mxu0 %v1024_v21  ;;  %v1038_v0 = vpack.c.bf16 %v479_v63, %v477_v62  ;;  %v478_v2 = vld [vmem:[#allocation7 + $0xb0] sm:$0xff]  ;;  %v483_v5 = vld [vmem:[#allocation7 + $0xd8] sm:$0xff]  ;;  %v485_v10 = vld [vmem:[#allocation7 + $0xe8] sm:$0xff]  ;;  %552 = vmatprep.mubr.f32.mxu0 %v1395_v16  ;;  %p1310_p4 = pneg %p1309_p10  ;;  %s1311_s26 = sshll.u32 %s1398_s22, 4  ;;  %s1312_s26 = int_to_ptr.vmem [resolvable:$false] %s1311_s26 }
  0x9f   : > { %1027 = vmatprep.subr.bf16.mxu0 %v1026_v22  ;;  %v482_v8 = vld [vmem:[#allocation7 + $0xd0] sm:$0xff]  ;;  %v487_v11 = vld [vmem:[#allocation7 + $0xf8] sm:$0xff]  ;;  %v484_v13 = vld [vmem:[#allocation7 + $0xe0] sm:$0xff]  ;;  %658 = vmatprep.mubr.f32.mxu1 %v1395_v16  ;;  %s1313_s24 = scalar_lea.vmem %s1312_s26, 32  ;;  %p1314_p7 = scmp.lt.s32.totalorder %s1773_s0, %s1312_s26 }
  0xa0   : > { %v1046_v12 = vpack.c.bf16 %v487_v11, %v485_v10  ;;  %v486_v14 = vld [vmem:[#allocation7 + $0xf0] sm:$0xff]  ;;  %p1315_p3 = scmp.lt.s32.totalorder %s1313_s24, %s1307_s23 }
  0xa1   : > { %v1048_v15 = vpack.c.bf16 %v486_v14, %v484_v13 }
  0xa2   : > { %1029 = vmatpush1.bf16.msra.mxu0 %v1028_v27  ;;  %p1316_p5 = por %p1315_p3, %p1314_p7 }
  0xa3   : > { %1031 = vmatprep.subr.bf16.mxu0 %v1030_v28 }
  0xa4   : > { %p1317_p9 = pnand %p1316_p5, %p1310_p4 }
  0xa6   : > { %1033 = vmatpush1.bf16.msra.mxu0 %v1032_v33 }
  0xa7   : > { %1035 = vmatprep.subr.bf16.mxu0 %v1034_v34 }
  0xaa   : > { %1037 = vmatpush1.bf16.msra.mxu0 %v1036_v61 }
  0xab   : > { %1039 = vmatprep.subr.bf16.mxu0 %v1038_v0 }
 0x122   : > { %v345_v35 = vpop.xlane.xlu0 %344  ;;  %v349_v36 = vpop.xlane.xlu1 %348 }
 0x123   : > { %v1670_v37 = vsub.f32 %v332_v3, %v345_v35  ;;  %v1672_v38 = vsub.f32 %v334_v4, %v349_v36  ;;  %v1040_v3 = vpack.c.bf16 %v478_v2, %v476_v1  ;;  %v481_v4 = vld [vmem:[#allocation7 + $0xc8] sm:$0xff] }
 0x125   : > { %v356_v39 = vmul.f32 1.442695, %v1670_v37  ;;  %v360_v40 = vmul.f32 1.442695, %v1672_v38  ;;  %1041 = vmatpush1.bf16.msra.mxu0 %v1040_v3 }
 0x126   : > { %v347_v41 = vpop.xlane.xlu0 %346  ;;  %v351_v42 = vpop.xlane.xlu1 %350 }
 0x127   : > { %1143 = vpow2.f32 %v356_v39  ;;  %v1676_v43 = vsub.f32 %v333_v6, %v347_v41  ;;  %v1678_v44 = vsub.f32 %v335_v7, %v351_v42  ;;  %v1042_v6 = vpack.c.bf16 %v483_v5, %v481_v4  ;;  %v480_v7 = vld [vmem:[#allocation7 + $0xc0] sm:$0xff] }
 0x128   : > { %1145 = vpow2.f32 %v360_v40  ;;  %v1044_v9 = vpack.c.bf16 %v482_v8, %v480_v7 }
 0x129   : > { %v358_v45 = vmul.f32 1.442695, %v1676_v43  ;;  %v362_v46 = vmul.f32 1.442695, %v1678_v44  ;;  %1043 = vmatprep.subr.bf16.mxu0 %v1042_v6 }
 0x12a   : > { %1045 = vmatpush1.bf16.msra.mxu0 %v1044_v9 }
 0x12b   : > { %1147 = vpow2.f32 %v358_v45  ;;  %1047 = vmatprep.subr.bf16.mxu0 %v1046_v12 }
 0x12c   : > { %1149 = vpow2.f32 %v362_v46 }
 0x12e   : > { %1049 = vmatpush1.bf16.msra.mxu0 %v1048_v15 }
 0x131   : > { %v1144_v47 = vpop.eup %1143 }
 0x132   : > { %364 = vadd.xlane.f32.xlu0 %v1144_v47  ;;  %v1146_v48 = vpop.eup %1145 }
 0x135   : > { %v1148_v50 = vpop.eup %1147 }
 0x136   : > { %368 = vadd.xlane.f32.xlu0 %v1146_v48  ;;  %366 = vadd.xlane.f32.xlu1 %v1148_v50  ;;  %v1150_v52 = vpop.eup %1149 }
 0x13a   : > { %384 = vmax.xlane.f32.xlu0 %v340_v51  ;;  %370 = vadd.xlane.f32.xlu1 %v1150_v52 }
 0x13e   : > { %388 = vmax.xlane.f32.xlu0 %v342_v55  ;;  %386 = vmax.xlane.f32.xlu1 %v341_v56 }
 0x142   : > { %390 = vmax.xlane.f32.xlu1 %v343_v60 }
 0x1bf   : > { %v365_v17 = vpop.xlane.xlu0 %364 }
 0x1c0   : > { %1151 = vlog2.f32 %v365_v17 }
 0x1c3   : > { %v367_v18 = vpop.xlane.xlu1 %366  ;;  %v369_v19 = vpop.xlane.xlu0 %368 }
 0x1c4   : > { %1153 = vlog2.f32 %v367_v18 }
 0x1c5   : > { %1155 = vlog2.f32 %v369_v19 }
 0x1c7   : > { %v371_v20 = vpop.xlane.xlu1 %370  ;;  %v385_v21 = vpop.xlane.xlu0 %384 }
 0x1c8   : > { %1157 = vlog2.f32 %v371_v20  ;;  %v1688_v22 = vsub.f32 %v340_v51, %v385_v21 }
 0x1ca   : > { %v1152_v23 = vpop.eup %1151  ;;  %v396_v24 = vmul.f32 1.442695, %v1688_v22 }
 0x1cb   : > { %v373_v25 = vmul.f32 0.6931472, %v1152_v23  ;;  %v387_v26 = vpop.xlane.xlu1 %386  ;;  %v389_v27 = vpop.xlane.xlu0 %388 }
 0x1cc   : > { %1159 = vpow2.f32 %v396_v24  ;;  %v1691_v28 = vsub.f32 %v341_v56, %v387_v26  ;;  %v1693_v29 = vsub.f32 %v342_v55, %v389_v27 }
 0x1cd   : > { %v380_v30 = vsub.f32 %v1670_v37, %v373_v25 }
 0x1ce   : > { %v1154_v31 = vpop.eup %1153  ;;  %v398_v32 = vmul.f32 1.442695, %v1691_v28  ;;  %v400_v33 = vmul.f32 1.442695, %v1693_v29 }
 0x1cf   : > { %v1156_v34 = vpop.eup %1155  ;;  %v375_v35 = vmul.f32 0.6931472, %v1154_v31  ;;  %v391_v36 = vpop.xlane.xlu1 %390  ;;  %553 = vmatmul.mubr.f32.vlgmr.msra.gmra.mrb[0].mxu0 %v380_v30 }
 0x1d0   : > { %1161 = vpow2.f32 %v398_v32  ;;  %v395_v39 = vsub.f32 %v343_v60, %v391_v36  ;;  %558 = vmatprep.mubr.f32.mxu0 %v1395_v16  ;;  %v377_v40 = vmul.f32 0.6931472, %v1156_v34  ;;  %v578_v34 = vld [vmem:[#allocation8 + $0x8] sm:$0xff]  ;;  %v580_v36 = vld [vmem:[#allocation8 + $0x18] sm:$0xff] }
 0x1d1   : > { %1163 = vpow2.f32 %v400_v33  ;;  %v381_v41 = vsub.f32 %v1676_v43, %v375_v35  ;;  %v577_v33 = vld [vmem:[#allocation8] sm:$0xff]  ;;  %v579_v35 = vld [vmem:[#allocation8 + $0x10] sm:$0xff] }
 0x1d2   : > { %v1158_v42 = vpop.eup %1157  ;;  %v402_v45 = vmul.f32 1.442695, %v395_v39  ;;  %v382_v46 = vsub.f32 %v1672_v38, %v377_v40 }
 0x1d3   : > { %559 = vmatmul.mubr.f32.gmra.mrb[2].mxu0 %v381_v41  ;;  %v379_v37 = vmul.f32 0.6931472, %v1158_v42 }
 0x1d4   : > { %1165 = vpow2.f32 %v402_v45  ;;  %564 = vmatprep.mubr.f32.mxu0 %v1395_v16 }
 0x1d5   : > { %v383_v48 = vsub.f32 %v1678_v44, %v379_v37 }
 0x1d6   : > { %v1160_v47 = vpop.eup %1159 }
 0x1d7   : > { %565 = vmatmul.mubr.f32.gmra.mrb[4].mxu0 %v382_v46  ;;  %404 = vadd.xlane.f32.xlu0 %v1160_v47 }
 0x1d8   : > { %570 = vmatprep.mubr.f32.mxu0 %v1395_v16 }
 0x1da   : > { %v1162_v49 = vpop.eup %1161 }
 0x1db   : > { %v1164_v50 = vpop.eup %1163  ;;  %406 = vadd.xlane.f32.xlu1 %v1162_v49  ;;  %571 = vmatmul.mubr.f32.gmra.mrb[6].mxu0 %v383_v48 }
 0x1dc   : > { %408 = vadd.xlane.f32.xlu0 %v1164_v50 }
 0x1de   : > { %v1166_v43 = vpop.eup %1165 }
 0x1df   : > { %410 = vadd.xlane.f32.xlu1 %v1166_v43 }
 0x264   : > { %v405_v51 = vpop.xlane.xlu0 %404 }
 0x265   : > { %1167 = vlog2.f32 %v405_v51 }
 0x266   : > { %1169 = vrcp.f32 %v405_v51 }
 0x268   : > { %v407_v52 = vpop.xlane.xlu1 %406 }
 0x269   : > { %1171 = vlog2.f32 %v407_v52  ;;  %v409_v38 = vpop.xlane.xlu0 %408 }
 0x26a   : > { %1173 = vrcp.f32 %v407_v52 }
 0x26b   : > { %1175 = vlog2.f32 %v409_v38 }
 0x26c   : > { %1177 = vrcp.f32 %v409_v38  ;;  %v411_v53 = vpop.xlane.xlu1 %410 }
 0x26d   : > { %1179 = vlog2.f32 %v411_v53 }
 0x26e   : > { %1181 = vrcp.f32 %v411_v53 }
 0x26f   : > { %v1168_v44 = vpop.eup %1167 }
 0x270   : > { %v413_v54 = vmul.f32 0.6931472, %v1168_v44  ;;  %v1170_v55 = vpop.eup %1169 }
 0x271   : > { %v432_v62 = vmul.f32 %v1170_v55, %v1160_v47  ;;  %v745_v47 = vlaneseq }
 0x272   : > { %v420_v56 = vsub.f32 %v1688_v22, %v413_v54 }
 0x273   : > { %v1172_v57 = vpop.eup %1171 }
 0x274   : > { %v1174_v58 = vpop.eup %1173  ;;  %v415_v59 = vmul.f32 0.6931472, %v1172_v57  ;;  %v436_v61 = vsub.f32 %v420_v56, %v380_v30 }
 0x275   : > { %v1176_v60 = vpop.eup %1175  ;;  %v433_v2 = vmul.f32 %v1174_v58, %v1162_v49 }
 0x276   : > { %v1178_v63 = vpop.eup %1177  ;;  %v421_v0 = vsub.f32 %v1691_v28, %v415_v59  ;;  %v417_v1 = vmul.f32 0.6931472, %v1176_v60  ;;  %v440_v9 = vmul.f32 %v436_v61, %v432_v62 }
 0x277   : > { %v1180_v3 = vpop.eup %1179  ;;  %v434_v8 = vmul.f32 %v1178_v63, %v1164_v50  ;;  %v1721_v50 = vld [vmem:[%s327_s17] sm:$0x3] }
 0x278   : > { %v1182_v4 = vpop.eup %1181  ;;  %v437_v5 = vsub.f32 %v421_v0, %v381_v41  ;;  %v422_v6 = vsub.f32 %v1693_v29, %v417_v1  ;;  %v419_v7 = vmul.f32 0.6931472, %v1180_v3  ;;  %vm773_vm3 = vcmp.ne.s32.totalorder %v1721_v50, 255 }
 0x279   : > { %v435_v11 = vmul.f32 %v1182_v4, %v1166_v43  ;;  %v1012_v44 = vsel %vm773_vm3, 1.0, %v1395_v16 }
 0x27a   : > { %v423_v10 = vsub.f32 %v395_v39, %v419_v7  ;;  %v438_v12 = vsub.f32 %v422_v6, %v382_v46  ;;  %v441_v13 = vmul.f32 %v437_v5, %v433_v2 }
 0x27c   : > { %v439_v14 = vsub.f32 %v423_v10, %v383_v48  ;;  %v442_v15 = vmul.f32 %v438_v12, %v434_v8  ;;  %v444_v17 = vadd.f32 %v441_v13, %v440_v9  ;;  %v1713_v48 = vshrl.u32 %v745_v47, 7 }
 0x27e   : > { %v443_v18 = vmul.f32 %v439_v14, %v435_v11  ;;  %v445_v19 = vadd.f32 %v444_v17, %v442_v15  ;;  %v1719_v49 = vsub.s32 0, %v1713_v48  ;;  %v1724_v43 = vsub.s32 1, %v1713_v48 }
 0x280   : > { %v446_v20 = vadd.f32 %v445_v19, %v443_v18  ;;  %v750_v51 = vrot.slane %v1721_v50, %v1719_v49  ;;  %v754_v52 = vrot.slane %v1721_v50, %v1724_v43  ;;  %v825_v54 = vrot.slane %v1012_v44, %v1719_v49 }
 0x281   : > { %v829_v55 = vrot.slane %v1012_v44, %v1724_v43 }
 0x282   : > { %447 = vadd.xlane.f32.xlu0 %v446_v20  ;;  %vm1731_vm1 = vcmp.eq.s32.totalorder %v1713_v48, %v750_v51  ;;  %vm1736_vm2 = vcmp.eq.s32.totalorder %v1713_v48, %v754_v52  ;;  %v832_v56 = vsel %vm806_vm4, %v825_v54, 0.0 }
 0x283   : > { %v833_v57 = vsel %vm806_vm4, %v829_v55, 0.0 }
 0x284   : > { %v834_v58 = vadd.f32 %v833_v57, %v832_v56 }
 0x286   : > { %835 = vadd.xlane.f32.xlu0 %v834_v58 }
 0x2a2   : > { %v554_v21 = vpop.f32.mrb[0].mxu0 }
 0x2a3   : > { %v556_v22 = vpop.f32.mrb[1].mxu0 }
 0x2a6   : > { %v560_v23 = vpop.f32.mrb[2].mxu0 }
 0x2a7   : > { %v1052_v24 = vpack.c.bf16 %v560_v23, %v554_v21  ;;  %v562_v25 = vpop.f32.mrb[3].mxu0 }
 0x2a8   : > { %v1050_v26 = vpack.c.bf16 %v562_v25, %v556_v22 }
 0x2aa   : > { %v566_v27 = vpop.f32.mrb[4].mxu0  ;;  %1051 = vmatprep.subr.bf16.mxu1 %v1050_v26 }
 0x2ab   : > { %v568_v28 = vpop.f32.mrb[5].mxu0  ;;  %1053 = vmatpush1.bf16.msra.mxu1 %v1052_v24 }
 0x2ae   : > { %v572_v29 = vpop.f32.mrb[6].mxu0 }
 0x2af   : > { %v1056_v30 = vpack.c.bf16 %v572_v29, %v566_v27  ;;  %v574_v31 = vpop.f32.mrb[7].mxu0 }
 0x2b0   : > { %v1054_v32 = vpack.c.bf16 %v574_v31, %v568_v28 }
 0x2b2   : > { %1055 = vmatprep.subr.bf16.mxu1 %v1054_v32 }
 0x2b3   : > { %1057 = vmatpush1.bf16.msra.mxu1 %v1056_v30 }
 0x2b6   : > { %1008 = vmatmul.mubr.msk.f32.vlgmr.msra.gmra.mrb[0].mxu1 %vm581_vm0, %v577_v33 }
 0x2b7   : > { %664 = vmatprep.mubr.f32.mxu1 %v1395_v16 }
 0x2ba   : > { %1009 = vmatmul.mubr.msk.f32.gmra.mrb[2].mxu1 %vm581_vm0, %v578_v34 }
 0x2bb   : > { %670 = vmatprep.mubr.f32.mxu1 %v1395_v16 }
 0x2be   : > { %1010 = vmatmul.mubr.msk.f32.gmra.mrb[4].mxu1 %vm581_vm0, %v579_v35 }
 0x2bf   : > { %676 = vmatprep.mubr.f32.mxu1 %v1395_v16  ;;  %v1396_v16 = vmov 0  }
 0x2c2   : > { %1011 = vmatmul.mubr.msk.f32.gmra.mrb[6].mxu1 %vm581_vm0, %v580_v36 }
 0x30f   : > { %v448_v39 = vpop.xlane.xlu0 %447 }
 0x310   : > { %v449_v40 = vrot.slane %v448_v39, 4 }
 0x312   : > { %v450_v41 = vadd.f32 %v449_v40, %v448_v39 }
 0x314   : > { %v451_v42 = vrot.slane %v450_v41, 2 }
 0x316   : > { %v452_v45 = vadd.f32 %v451_v42, %v450_v41 }
 0x318   : > { %v453_v37 = vrot.slane %v452_v45, 1 }
 0x31a   : > { %v454_v46 = vadd.f32 %v453_v37, %v452_v45 }
 0x31c   : > { %1058 = vpush %v454_v46 }
 0x34d   : > { %s1059_s13 = spop %1058 }
 0x389   : > { %v660_v59 = vpop.f32.mrb[0].mxu1 }
 0x38a   : > { %v662_v60 = vpop.f32.mrb[1].mxu1 }
 0x38d   : > { %v666_v61 = vpop.f32.mrb[2].mxu1 }
 0x38e   : > { %vm683_vm5 = vcmp.gt.f32.partialorder %v666_v61, %v660_v59  ;;  %v668_v62 = vpop.f32.mrb[3].mxu1 }
 0x38f   : > { %v685_v63 = vsel %vm683_vm5, %v666_v61, %v660_v59  ;;  %vm684_vm6 = vcmp.gt.f32.partialorder %v668_v62, %v662_v60  ;;  %v687_v2 = vsel %vm683_vm5, 1, %v1396_v16 }
 0x390   : > { %v686_v0 = vsel %vm684_vm6, %v668_v62, %v662_v60  ;;  %v688_v4 = vsel %vm684_vm6, 1, %v1396_v16 }
 0x391   : > { %v672_v1 = vpop.f32.mrb[4].mxu1 }
 0x392   : > { %vm689_vm7 = vcmp.gt.f32.partialorder %v672_v1, %v685_v63  ;;  %v674_v3 = vpop.f32.mrb[5].mxu1 }
 0x393   : > { %vm690_vm8 = vcmp.gt.f32.partialorder %v674_v3, %v686_v0  ;;  %v691_v5 = vsel %vm689_vm7, %v672_v1, %v685_v63  ;;  %v693_v6 = vsel %vm689_vm7, 2, %v687_v2 }
 0x394   : > { %v692_v7 = vsel %vm690_vm8, %v674_v3, %v686_v0  ;;  %v694_v8 = vsel %vm690_vm8, 2, %v688_v4 }
 0x395   : > { %v678_v9 = vpop.f32.mrb[6].mxu1 }
 0x396   : > { %vm695_vm9 = vcmp.gt.f32.partialorder %v678_v9, %v691_v5  ;;  %v680_v10 = vpop.f32.mrb[7].mxu1 }
 0x397   : > { %v697_v11 = vsel %vm695_vm9, 3, %v693_v6  ;;  %vm696_vm11 = vcmp.gt.f32.partialorder %v680_v10, %v692_v7  ;;  %v1397_v10 = vmov 1966171168  }
 0x398   : > { %v699_v12 = vcvt.s32.f32 %v697_v11  ;;  %v698_v13 = vsel %vm696_vm11, 3, %v694_v8  ;;  %v780_v11 = vunpack.c.l.s4 %v1397_v10 }
 0x399   : > { %v700_v14 = vcvt.s32.f32 %v698_v13 }
 0x39a   : > { %v702_v15 = vsel %vm701_vm10, %v699_v12, -inf }
 0x39b   : > { %v703_v17 = vrot.slane %v702_v15, 4  ;;  %v709_v18 = vsel %vm701_vm10, %v700_v14, -inf }
 0x39c   : > { %v710_v19 = vrot.slane %v709_v18, 4 }
 0x39d   : > { %v704_v20 = vmax.f32 %v702_v15, %v703_v17  ;;  %v781_v15 = vunpack.c.0.s8 %v780_v11 }
 0x39e   : > { %v711_v21 = vmax.f32 %v709_v18, %v710_v19 }
 0x39f   : > { %v705_v22 = vrot.slane %v704_v20, 2 }
 0x3a0   : > { %v712_v23 = vrot.slane %v711_v21, 2 }
 0x3a1   : > { %v706_v24 = vmax.f32 %v704_v20, %v705_v22  ;;  %v784_v20 = vsub.s32 %v781_v15, %v1713_v48 }
 0x3a2   : > { %v713_v25 = vmax.f32 %v711_v21, %v712_v23 }
 0x3a3   : > { %v707_v26 = vrot.slane %v706_v24, 1 }
 0x3a4   : > { %v714_v27 = vrot.slane %v713_v25, 1 }
 0x3a5   : > { %v708_v28 = vmax.f32 %v706_v24, %v707_v26 }
 0x3a6   : > { %v715_v29 = vmax.f32 %v713_v25, %v714_v27 }
 0x3a7   : > { %v716_v30 = vsub.f32 %v699_v12, %v708_v28 }
 0x3a8   : > { %v717_v31 = vsub.f32 %v700_v14, %v715_v29 }
 0x3a9   : > { %v718_v32 = vmul.f32 1.442695, %v716_v30  ;;  %v836_v30 = vpop.xlane.xlu0 %835 }
 0x3aa   : > { %v720_v33 = vmul.f32 1.442695, %v717_v31  ;;  %v837_v31 = vrot.slane %v836_v30, 4 }
 0x3ab   : > { %1183 = vpow2.f32 %v718_v32 }
 0x3ac   : > { %1185 = vpow2.f32 %v720_v33  ;;  %v838_v32 = vadd.f32 %v837_v31, %v836_v30 }
 0x3ae   : > { %v839_v48 = vrot.slane %v838_v32, 2 }
 0x3b5   : > { %v1184_v34 = vpop.eup %1183 }
 0x3b6   : > { %v1186_v35 = vpop.eup %1185  ;;  %v722_v36 = vsel %vm701_vm10, %v1184_v34, 0.0 }
 0x3b7   : > { %v723_v39 = vrot.slane %v722_v36, 4  ;;  %v729_v40 = vsel %vm701_vm10, %v1186_v35, 0.0 }
 0x3b8   : > { %v730_v41 = vrot.slane %v729_v40, 4 }
 0x3b9   : > { %v724_v42 = vadd.f32 %v723_v39, %v722_v36  ;;  %v840_v36 = vadd.f32 %v839_v48, %v838_v32 }
 0x3ba   : > { %v731_v45 = vadd.f32 %v730_v41, %v729_v40 }
 0x3bb   : > { %v725_v37 = vrot.slane %v724_v42, 2  ;;  %v841_v40 = vrot.slane %v840_v36, 1 }
 0x3bc   : > { %v732_v46 = vrot.slane %v731_v45, 2 }
 0x3bd   : > { %v726_v51 = vadd.f32 %v725_v37, %v724_v42  ;;  %v845_v42 = vand.u32 127, %v745_v47 }
 0x3be   : > { %v733_v52 = vadd.f32 %v732_v46, %v731_v45  ;;  %v847_v45 = vstv %s1059_s13 }
 0x3bf   : > { %v727_v44 = vrot.slane %v726_v51, 1  ;;  %vm846_vm12 = vcmp.eq.s32.totalorder %v845_v42, 0  ;;  %vm849_vm13 = vcmp.eq.s32.totalorder %v845_v42, 1  ;;  %vm853_vm14 = vcmp.eq.s32.totalorder %v845_v42, 2 }
 0x3c0   : > { %v734_v54 = vrot.slane %v733_v52, 1  ;;  %v848_v46 = vsel %vm846_vm12, %v847_v45, 0.0 }
 0x3c1   : > { %v728_v55 = vadd.f32 %v727_v44, %v726_v51 }
 0x3c2   : > { %v735_v56 = vadd.f32 %v734_v54, %v733_v52 }
 0x3c3   : > { %1187 = vlog2.f32 %v728_v55 }
 0x3c4   : > { %1189 = vlog2.f32 %v735_v56 }
 0x3cd   : > { %v1188_v57 = vpop.eup %1187 }
 0x3ce   : > { %v1190_v58 = vpop.eup %1189  ;;  %v737_v59 = vmul.f32 0.6931472, %v1188_v57 }
 0x3cf   : > { %v739_v60 = vmul.f32 0.6931472, %v1190_v58 }
 0x3d0   : > { %v740_v61 = vadd.f32 %v737_v59, %v708_v28 }
 0x3d1   : > { %v741_v62 = vadd.f32 %v739_v60, %v715_v29 }
 0x3d2   : > { %v742_v63 = vsub.f32 %v699_v12, %v740_v61 }
 0x3d3   : > { %v743_v0 = vsub.f32 %v700_v14, %v741_v62 }
 0x3d4   : > { %v757_v1 = vsel %vm1731_vm1, %v742_v63, 0.0 }
 0x3d5   : > { %v759_v16 = vsel %vm701_vm10, %v757_v1, 0.0  ;;  %v758_v2 = vsel %vm1736_vm2, %v743_v0, 0.0 }
 0x3d6   : > { %v760_v3 = vrot.slane %v759_v16, 4  ;;  %v766_v4 = vsel %vm701_vm10, %v758_v2, 0.0 }
 0x3d7   : > { %v767_v5 = vrot.slane %v766_v4, 4 }
 0x3d8   : > { %v761_v6 = vadd.f32 %v760_v3, %v759_v16 }
 0x3d9   : > { %v768_v7 = vadd.f32 %v767_v5, %v766_v4 }
 0x3da   : > { %v762_v8 = vrot.slane %v761_v6, 2 }
 0x3db   : > { %v769_v9 = vrot.slane %v768_v7, 2 }
 0x3dc   : > { %v763_v12 = vadd.f32 %v762_v8, %v761_v6 }
 0x3dd   : > { %v770_v13 = vadd.f32 %v769_v9, %v768_v7 }
 0x3de   : > { %v764_v14 = vrot.slane %v763_v12, 1 }
 0x3df   : > { %v771_v38 = vrot.slane %v770_v13, 1 }
 0x3e0   : > { %v765_v17 = vadd.f32 %v764_v14, %v763_v12 }
 0x3e1   : > { %v772_v18 = vadd.f32 %v771_v38, %v770_v13 }
 0x3e2   : > { %v774_v19 = vsub.f32 0.0, %v765_v17 }
 0x3e3   : > { %v775_v53 = vsub.f32 0.0, %v772_v18 }
 0x3e5   : > { %v778_v21 = vcombine.low %v774_v19, %v775_v53 }
 0x3e7   : > { %v785_v22 = vrot.slane %v778_v21, %v784_v20 }
 0x3e9   : > { %v792_v23 = vrot.slane %v785_v22, %v784_v20 }
 0x3eb   : > { %v794_v24 = vsel %vm773_vm3, %v792_v23, 0.0 }
 0x3ec   : > { %v799_v25 = vrot.slane %v794_v24, %v1719_v49  ;;  %v803_v26 = vrot.slane %v794_v24, %v1724_v43  ;;  %v842_v43 = vadd.f32 %v841_v40, %v840_v36 }
 0x3ee   : > { %v807_v27 = vsel %vm806_vm4, %v799_v25, 0.0  ;;  %v808_v28 = vsel %vm806_vm4, %v803_v26, 0.0 }
 0x3ef   : > { %v809_v29 = vadd.f32 %v808_v28, %v807_v27 }
 0x3f1   : > { %810 = vadd.xlane.f32.xlu1 %v809_v29 }
 0x47e   : > { %v811_v33 = vpop.xlane.xlu1 %810 }
 0x47f   : > { %v812_v34 = vrot.slane %v811_v33, 4 }
 0x481   : > { %v813_v35 = vadd.f32 %v812_v34, %v811_v33 }
 0x483   : > { %v814_v50 = vrot.slane %v813_v35, 2 }
 0x485   : > { %v815_v39 = vadd.f32 %v814_v50, %v813_v35 }
 0x487   : > { %v816_v49 = vrot.slane %v815_v39, 1 }
 0x489   : > { %v817_v41 = vadd.f32 %v816_v49, %v815_v39 }
 0x48b   : > { %1060 = vpush %v817_v41 }
 0x48c   : > { %1062 = vpush %v842_v43 }
 0x4bc   : > { %s1061_s7 = spop %1060 }
 0x4bd   : > { %v850_v37 = vstv %s1061_s7  ;;  %s1063_s12 = spop %1062 }
 0x4be   : > { %v851_v51 = vsel %vm849_vm13, %v850_v37, 0.0  ;;  %v854_v52 = vstv %s1063_s12 }
 0x4bf   : > { %v852_v44 = vadd.f32 %v851_v51, %v848_v46  ;;  %v855_v54 = vsel %vm853_vm14, %v854_v52, 0.0 }
 0x4c1   : > { %v856_v55 = vadd.f32 %v855_v54, %v852_v44 }
 0x4c3   : > { %857 = vst [vmem:[%s323_s28] sm:$0x1] %v856_v55 }
 0x4c4   : > { %1320 = shalt.err (!%p1317_p9)
}
 0x4c5   : > { %s1321_s15 = scalar_lea.hbm %s1771_s2, 16  ;;  %s1325_s11 = scalar_lea.hbm %s1820_s5, 32 }
 0x4c6   : > { %p1322_p0 = scmp.ne.s32.totalorder %s1771_s2, %s1321_s15  ;;  %p1326_p1 = scmp.lt.u32.totalorder %s1771_s2, %s1820_s5 }
 0x4c7   : > { %p1327_p12 = scmp.lt.u32.totalorder %s1325_s11, %s1321_s15  ;;  %p1329_p13 = scmp.lt.u32.totalorder %s1321_s15, %s1771_s2 }
 0x4c8   : > { %p1323_p8 = pnand %p1322_p0, %p1850_p6 }
 0x4c9   : > { %p1328_p2 = por %p1327_p12, %p1326_p1 }
 0x4ca   : > { %p1324_p11 = pneg %p1323_p8 }
 0x4cb   : > { %p1330_p10 = por %p1329_p13, %p1328_p2 }
 0x4cd   : > { %p1331_p4 = pnand %p1330_p10, %p1324_p11 }
 0x4cf   : > { %1334 = shalt.err (!%p1331_p4)
}
 0x4d0   : > { %1076 = dma.vmem_to_hbm [thread:$0]  (%p1850_p6), %s1773_s0, 16, %s1771_s2, %s859_s14  }
 0x4d1 PF: > { %s883_s7 = sand.u32 1, %s1373_s18   ;;  %p1851_p7 = scmp.ne.s32.totalorder %s1831_s25, 0 }
 0x4d2   : > { %p1852_p3 = scmp.ge.s32.totalorder %s1385_s21, 2  ;;  %s884_s12 = scalar_lea.sflag [#allocation4], %s883_s7 }
 0x4d4   : > { %p1093_p5 = pnand %p1852_p3, %p1851_p7 }
 0x4d6   : > { %1368 = dma.done.wait (!%p1093_p5), %s884_s12, 16  }
 0x4d7   : > { %1370 = vsyncadd (!%p1093_p5), %s884_s12, 4294967280  ;;  %p22_p9 = scmp.ge.s32.totalorder %s1542_s16, 4   ;;  %s1853_s18 = smov %s1377_s19 }
 0x4d8   : > { %s1854_s19 = smov %s1381_s20  ;;  %s1855_s20 = smov %s1551_s27 }
 0x4d9   : > { %s1856_s21 = smov %s1542_s16  ;;  %24 = sbr.rel (!%p22_p9) target bundleno = 11 (0xb), region = 109 }
 0x4e0   :  { %888 = vsyncpa [#allocation3], 1 }
 0x4e1   :  { %890 = vsyncpa [#allocation3 + $0x1], 1 }
 0x4e2   :  { %891 = vsyncpa [#allocation6], 1 }
 0x4e3   :  { %893 = vsyncpa [#allocation6 + $0x1], 1 }
 0x4e4   :  { %894 = vsyncpa [#allocation9], 1 }
 0x4e5   :  { %895 = vsyncpa [#allocation4], 1 }
 0x4e6   :  { %897 = vsyncpa [#allocation4 + $0x1], 1 }

</bundles_post_ra>
